<compile_context>
chip_gen: v7x
topology: tpu7x:2x2x1
jax: 0.10.0
libtpu: 0.0.40
codegen_flags: <defaults>
</compile_context>

<pallas_src>
import math

import jax
import jax.numpy as jnp
from jax.experimental import pallas as pl
from jax.experimental.pallas import tpu as pltpu

BN_EPS = 1e-5


# ---------------------------------------------------------------------------
# Tiling helpers
# ---------------------------------------------------------------------------
def _round_up(x, m):
    return ((x + m - 1) // m) * m


def _pick_tile(size, base, cap):
    """Largest multiple of `base` that divides `size` and does not exceed `cap`."""
    best = base
    t = base
    while t <= min(size, cap):
        if size % t == 0:
            best = t
        t += base
    return best


def _plan_m(M):
    Mp = _round_up(M, 8)
    return Mp, _pick_tile(Mp, 8, 256)


def _plan_n(N):
    if N % 128 == 0:
        return N, _pick_tile(N, 128, 256)
    if N % 8 == 0 and N < 128:
        return N, N            # full-dim lane block (e.g. Cout = 64)
    Np = _round_up(N, 128)     # keep narrow outputs (e.g. FC num_classes) lane-dense
    return Np, 128


def _plan_k(K):
    if K <= 512:
        return K, K            # single K step, full-dim block (e.g. 147, 64, 512)
    Kp = _round_up(K, 128)
    return Kp, _pick_tile(Kp, 128, 512)


def _pad2d(a, rows, cols):
    r, c = a.shape
    if r == rows and c == cols:
        return a
    return jnp.pad(a, ((0, rows - r), (0, cols - c)))


# ---------------------------------------------------------------------------
# Pallas kernels
# ---------------------------------------------------------------------------
def _matmul_kernel(x_ref, w_ref, o_ref, acc_ref):
    @pl.when(pl.program_id(2) == 0)
    def _():
        acc_ref[...] = jnp.zeros_like(acc_ref)

    acc_ref[...] += jnp.dot(x_ref[...], w_ref[...],
                            preferred_element_type=jnp.float32)

    @pl.when(pl.program_id(2) == pl.num_programs(2) - 1)
    def _():
        o_ref[...] = acc_ref[...]


def _matmul_bias_kernel(x_ref, w_ref, b_ref, o_ref, acc_ref):
    @pl.when(pl.program_id(2) == 0)
    def _():
        acc_ref[...] = jnp.zeros_like(acc_ref)

    acc_ref[...] += jnp.dot(x_ref[...], w_ref[...],
                            preferred_element_type=jnp.float32)

    @pl.when(pl.program_id(2) == pl.num_programs(2) - 1)
    def _():
        o_ref[...] = acc_ref[...] + b_ref[...]


def _colstats_kernel(y_ref, s_ref, q_ref, acc_s, acc_q):
    # Per-channel sum and sum-of-squares, accumulated over the M grid axis.
    @pl.when(pl.program_id(0) == 0)
    def _():
        acc_s[...] = jnp.zeros_like(acc_s)
        acc_q[...] = jnp.zeros_like(acc_q)

    y = y_ref[...]
    acc_s[...] += jnp.sum(y, axis=0, keepdims=True)
    acc_q[...] += jnp.sum(y * y, axis=0, keepdims=True)

    @pl.when(pl.program_id(0) == pl.num_programs(0) - 1)
    def _():
        s_ref[...] = acc_s[...]
        q_ref[...] = acc_q[...]


def _make_epilogue_kernel(add_res, relu):
    """y * scale + shift (+ residual) (+ relu), tiled over M and N."""

    def kernel(*refs):
        if add_res:
            y_ref, s_ref, t_ref, r_ref, o_ref = refs
        else:
            y_ref, s_ref, t_ref, o_ref = refs
        y = y_ref[...] * s_ref[...] + t_ref[...]
        if add_res:
            y = y + r_ref[...]
        if relu:
            y = jnp.maximum(y, 0.0)
        o_ref[...] = y

    return kernel


def _global_avgpool_kernel(x_ref, o_ref):
    # (N, HW, C) -> (N, C): single sublane reduction instead of an unrolled loop.
    o_ref[...] = jnp.mean(x_ref[...], axis=1)


# ---------------------------------------------------------------------------
# Pallas wrappers
# ---------------------------------------------------------------------------
def tiled_matmul(x2d, w2d, bias=None):
    """Tiled matmul with bf16 MXU operands and f32 accumulation.

    Returns the zero-padded (Mp, Np) f32 result plus the tiling plan so that
    downstream kernels (BN stats / epilogue) can reuse it.
    """
    M, K = x2d.shape
    Kw, N = w2d.shape
    assert K == Kw
    Mp, tm = _plan_m(M)
    Np, tn = _plan_n(N)
    Kp, tk = _plan_k(K)

    x_p = _pad2d(x2d, Mp, Kp).astype(jnp.bfloat16)
    w_p = _pad2d(w2d, Kp, Np).astype(jnp.bfloat16)

    in_specs = [
        pl.BlockSpec((tm, tk), lambda i, j, k: (i, k)),
        pl.BlockSpec((tk, tn), lambda i, j, k: (k, j)),
    ]
    inputs = [x_p, w_p]
    if bias is not None:
        b_p = jnp.pad(bias.astype(jnp.float32), (0, Np - N)).reshape(1, Np)
        in_specs.append(pl.BlockSpec((1, tn), lambda i, j, k: (0, j)))
        inputs.append(b_p)
        kernel = _matmul_bias_kernel
    else:
        kernel = _matmul_kernel

    out = pl.pallas_call(
        kernel,
        out_shape=jax.ShapeDtypeStruct((Mp, Np), jnp.float32),
        grid_spec=pltpu.PrefetchScalarGridSpec(
            num_scalar_prefetch=0,
            grid=(Mp // tm, Np // tn, Kp // tk),
            in_specs=in_specs,
            out_specs=pl.BlockSpec((tm, tn), lambda i, j, k: (i, j)),
            scratch_shapes=[pltpu.VMEM((tm, tn), jnp.float32)],
        ),
        compiler_params=pltpu.CompilerParams(
            dimension_semantics=("parallel", "parallel", "arbitrary")),
    )(*inputs)
    return out, (Mp, Np, tm, tn)


def column_stats(y_pad, tm, true_rows):
    """Per-channel mean/var over the first `true_rows` rows (padded rows are zero)."""
    Mp, Np = y_pad.shape
    col_sum, col_sq = pl.pallas_call(
        _colstats_kernel,
        out_shape=(jax.ShapeDtypeStruct((1, Np), jnp.float32),
                   jax.ShapeDtypeStruct((1, Np), jnp.float32)),
        grid_spec=pltpu.PrefetchScalarGridSpec(
            num_scalar_prefetch=0,
            grid=(Mp // tm,),
            in_specs=[pl.BlockSpec((tm, Np), lambda i: (i, 0))],
            out_specs=(pl.BlockSpec((1, Np), lambda i: (0, 0)),
                       pl.BlockSpec((1, Np), lambda i: (0, 0))),
            scratch_shapes=[pltpu.VMEM((1, Np), jnp.float32),
                            pltpu.VMEM((1, Np), jnp.float32)],
        ),
        compiler_params=pltpu.CompilerParams(dimension_semantics=("arbitrary",)),
    )(y_pad)
    mean = col_sum[0] / true_rows
    var = jnp.maximum(col_sq[0] / true_rows - mean * mean, 0.0)
    return mean, var


def bn_epilogue(y_pad, scale, shift, residual_pad, relu, tm, tn):
    Mp, Np = y_pad.shape
    in_specs = [pl.BlockSpec((tm, tn), lambda i, j: (i, j)),
                pl.BlockSpec((1, tn), lambda i, j: (0, j)),
                pl.BlockSpec((1, tn), lambda i, j: (0, j))]
    inputs = [y_pad, scale.reshape(1, Np), shift.reshape(1, Np)]
    add_res = residual_pad is not None
    if add_res:
        in_specs.append(pl.BlockSpec((tm, tn), lambda i, j: (i, j)))
        inputs.append(residual_pad)

    return pl.pallas_call(
        _make_epilogue_kernel(add_res, relu),
        out_shape=jax.ShapeDtypeStruct((Mp, Np), jnp.float32),
        grid_spec=pltpu.PrefetchScalarGridSpec(
            num_scalar_prefetch=0,
            grid=(Mp // tm, Np // tn),
            in_specs=in_specs,
            out_specs=pl.BlockSpec((tm, tn), lambda i, j: (i, j)),
        ),
        compiler_params=pltpu.CompilerParams(
            dimension_semantics=("parallel", "parallel")),
    )(*inputs)


def global_avgpool(x):
    N, H, W, C = x.shape
    x3 = x.reshape(N, H * W, C).astype(jnp.float32)
    return pl.pallas_call(
        _global_avgpool_kernel,
        out_shape=jax.ShapeDtypeStruct((N, C), jnp.float32),
        in_specs=[pl.BlockSpec(memory_space=pltpu.MemorySpace.VMEM)],
        out_specs=pl.BlockSpec(memory_space=pltpu.MemorySpace.VMEM),
    )(x3)


# ---------------------------------------------------------------------------
# JAX glue: im2col / pooling / layers
# ---------------------------------------------------------------------------
def im2col(x, kh, kw, stride, pad):
    """x: (N, H, W, C) -> (N*OH*OW, KH*KW*C), plus OH, OW."""
    N, H, W, C = x.shape
    if pad > 0:
        x = jnp.pad(x, ((0, 0), (pad, pad), (pad, pad), (0, 0)))
    OH = (H + 2 * pad - kh) // stride + 1
    OW = (W + 2 * pad - kw) // stride + 1
    cols = []
    for i in range(kh):
        for j in range(kw):
            cols.append(x[:, i:i + stride * OH:stride, j:j + stride * OW:stride, :])
    patches = jnp.stack(cols, axis=3)  # (N, OH, OW, KH*KW, C)
    return patches.reshape(N * OH * OW, kh * kw * C), OH, OW


def conv2d(x, conv_p, stride, pad, bn_p=None, relu=False, residual=None):
    w = conv_p["w"]  # PyTorch layout (Cout, Cin, KH, KW)
    cout, cin, kh, kw = w.shape
    Nb = x.shape[0]
    patches, OH, OW = im2col(x, kh, kw, stride, pad)
    M = Nb * OH * OW
    w2d = jnp.transpose(w, (2, 3, 1, 0)).reshape(kh * kw * cin, cout)

    use_bn = bn_p is not None
    # BN's mean subtraction cancels a per-channel conv bias exactly -> skip it.
    bias = None if use_bn else conv_p["b"]

    y_pad, (Mp, Np, tm, tn) = tiled_matmul(patches, w2d, bias=bias)

    if use_bn:
        # Padded rows/cols of y_pad are exactly zero (no bias added), so the
        # per-channel sums are exact when divided by the true row count M.
        mean, var = column_stats(y_pad, tm, float(M))
        gamma = jnp.pad(bn_p["gamma"].astype(jnp.float32), (0, Np - cout))
        beta = jnp.pad(bn_p["beta"].astype(jnp.float32), (0, Np - cout))
        scale = gamma * jax.lax.rsqrt(var + BN_EPS)
        shift = beta - mean * scale
        if residual is not None:
            res_pad = _pad2d(residual.reshape(M, cout).astype(jnp.float32), Mp, Np)
        else:
            res_pad = None
        y_pad = bn_epilogue(y_pad, scale, shift, res_pad, relu, tm, tn)
    else:
        assert residual is None and not relu

    return y_pad[:M, :cout].reshape(Nb, OH, OW, cout)


def maxpool_3x3_s2_p1(x):
    # 9-tap max tree in plain JAX glue: XLA fuses the strided slices + maximum
    # without materializing a (9, M, C) stack in HBM (per perf review).
    N, H, W, C = x.shape
    xp = jnp.pad(x, ((0, 0), (1, 1), (1, 1), (0, 0)), constant_values=-jnp.inf)
    OH = (H + 2 - 3) // 2 + 1
    OW = (W + 2 - 3) // 2 + 1
    out = None
    for i in range(3):
        for j in range(3):
            tap = xp[:, i:i + 2 * OH:2, j:j + 2 * OW:2, :]
            out = tap if out is None else jnp.maximum(out, tap)
    return out


def linear(x2d, w, b):
    # x2d: (N, 512); w: (num_classes, 512).  N is padded to 128 lanes inside the
    # tiled matmul (lane-dense stores) and sliced back here.
    y_pad, _ = tiled_matmul(x2d, w.T, bias=b)
    return y_pad[:x2d.shape[0], :w.shape[0]]


def res_block(x, p):
    # Y = relu(bn1(conv1(X))); Y = bn2(conv2(Y)); X' = conv3(X) or X; relu(Y + X')
    y = conv2d(x, p["conv1"], stride=p["stride"], pad=1, bn_p=p["bn1"], relu=True)
    if p["conv3"] is not None:
        shortcut = conv2d(x, p["conv3"], stride=p["stride"], pad=0)
    else:
        shortcut = x
    y = conv2d(y, p["conv2"], stride=1, pad=1, bn_p=p["bn2"], relu=True,
               residual=shortcut)
    return y


def resnet18_forward(params, x_nchw):
    x = jnp.transpose(x_nchw, (0, 2, 3, 1)).astype(jnp.float32)  # NCHW -> NHWC
    # b1: conv 7x7 s2 p3 + BN + ReLU + maxpool 3x3 s2 p1
    x = conv2d(x, params["b1_conv"], stride=2, pad=3, bn_p=params["b1_bn"], relu=True)
    x = maxpool_3x3_s2_p1(x)
    # b2..b5: residual stages
    for blk in params["blocks"]:
        x = res_block(x, blk)
    # last: AdaptiveAvgPool2d((1,1)) + Flatten + Linear(512, num_classes)
    pooled = global_avgpool(x)                                   # (N, 512)
    return linear(pooled, params["fc_w"], params["fc_b"])


# ---------------------------------------------------------------------------
# Deterministic parameter initialization (matches the PyTorch module's shapes)
# ---------------------------------------------------------------------------
def init_conv(key, cin, cout, kh, kw):
    k_w, k_b = jax.random.split(key)
    bound = 1.0 / math.sqrt(cin * kh * kw)
    w = jax.random.uniform(k_w, (cout, cin, kh, kw), jnp.float32, -bound, bound)
    b = jax.random.uniform(k_b, (cout,), jnp.float32, -bound, bound)
    return {"w": w, "b": b}


def init_bn(key, c):
    k_g, k_b = jax.random.split(key)
    return {"gamma": 1.0 + 0.1 * jax.random.normal(k_g, (c,), jnp.float32),
            "beta": 0.1 * jax.random.normal(k_b, (c,), jnp.float32)}


def init_resnet18(key, num_classes=5):
    arch = ((2, 64), (2, 128), (2, 256), (2, 512))
    keys = jax.random.split(key, 64)
    ki = iter(range(64))

    params = {
        "b1_conv": init_conv(keys[next(ki)], 3, 64, 7, 7),
        "b1_bn": init_bn(keys[next(ki)], 64),
    }
    blocks = []
    prev = arch[0][1]
    for i, (num_res, num_ch) in enumerate(arch):
        for j in range(num_res):
            use_1x1 = (j == 0 and i != 0)
            stride = 2 if use_1x1 else 1
            blk = {
                "stride": stride,
                "conv1": init_conv(keys[next(ki)], prev, num_ch, 3, 3),
                "bn1": init_bn(keys[next(ki)], num_ch),
                "conv2": init_conv(keys[next(ki)], num_ch, num_ch, 3, 3),
                "bn2": init_bn(keys[next(ki)], num_ch),
                "conv3": (init_conv(keys[next(ki)], prev, num_ch, 1, 1)
                          if use_1x1 else None),
            }
            blocks.append(blk)
            prev = num_ch
    params["blocks"] = blocks

    k_fw, k_fb = jax.random.split(keys[next(ki)])
    bound = 1.0 / math.sqrt(512)
    params["fc_w"] = jax.random.uniform(k_fw, (num_classes, 512), jnp.float32,
                                        -bound, bound)
    params["fc_b"] = jax.random.uniform(k_fb, (num_classes,), jnp.float32,
                                        -bound, bound)
    return params


if __name__ == "__main__":
    root = jax.random.PRNGKey(0)
    pkey, xkey = jax.random.split(root)
    params = init_resnet18(pkey, num_classes=5)
    # Small, model-consistent input: batch=2, RGB, 32x32 (NCHW like PyTorch).
    x = jax.random.normal(xkey, (2, 3, 32, 32), jnp.float32)

    logits = resnet18_forward(params, x)
    logits = jax.block_until_ready(logits)

    assert logits.shape == (2, 5), logits.shape
    assert bool(jnp.all(jnp.isfinite(logits)))
    print("KERNEL_OK")
</pallas_src>

<mosaic_0001>
module attributes {stable_mosaic.version = 11 : i64} {
  func.func @_matmul_kernel(%arg0: i32, %arg1: i32, %arg2: i32, %arg3: memref<256x147xbf16, #tpu.memory_space<vmem>>, %arg4: memref<147x64xbf16, #tpu.memory_space<vmem>>, %arg5: memref<256x64xf32, #tpu.memory_space<vmem>>, %arg6: memref<256x64xf32, #tpu.memory_space<vmem>>) attributes {dimension_semantics = [#tpu.dimension_semantics<parallel>, #tpu.dimension_semantics<parallel>, #tpu.dimension_semantics<arbitrary>], iteration_bounds = array<i64: 2, 1, 1>, scalar_prefetch = 0 : i64, scratch_operands = 1 : i64, tpu.core_type = #tpu.core_type<tc>, window_params = [{transform_indices = @transform_0, window_bounds = array<i64: 256, 147>}, {transform_indices = @transform_1, window_bounds = array<i64: 147, 64>}, {transform_indices = @transform_2, window_bounds = array<i64: 256, 64>}]} {
    %c0_i32 = arith.constant 0 : i32
    %0 = arith.cmpi eq, %arg2, %c0_i32 : i32
    %1 = arith.extui %0 : i1 to i32
    %c0_i32_0 = arith.constant 0 : i32
    %2 = arith.cmpi ne, %1, %c0_i32_0 : i32
    scf.if %2 {
      %cst_10 = arith.constant 0.000000e+00 : f32
      %12 = vector.broadcast %cst_10 : f32 to vector<256x64xf32>
      %c0_11 = arith.constant 0 : index
      %c0_12 = arith.constant 0 : index
      %13 = vector.load %arg6[%c0_11, %c0_12] : memref<256x64xf32, #tpu.memory_space<vmem>>, vector<256x64xf32>
      tpu.vector_store %arg6[%c0_11, %c0_12], %12 {strides = array<i32>} : memref<256x64xf32, #tpu.memory_space<vmem>>, vector<256x64xf32>,
    } else {
    }
    %c0 = arith.constant 0 : index
    %c0_1 = arith.constant 0 : index
    %3 = vector.load %arg6[%c0, %c0_1] : memref<256x64xf32, #tpu.memory_space<vmem>>, vector<256x64xf32>
    %c0_2 = arith.constant 0 : index
    %c0_3 = arith.constant 0 : index
    %4 = vector.load %arg3[%c0_2, %c0_3] : memref<256x147xbf16, #tpu.memory_space<vmem>>, vector<256x147xbf16>
    %c0_4 = arith.constant 0 : index
    %c0_5 = arith.constant 0 : index
    %5 = vector.load %arg4[%c0_4, %c0_5] : memref<147x64xbf16, #tpu.memory_space<vmem>>, vector<147x64xbf16>
    %cst = arith.constant dense<0.000000e+00> : vector<256x64xf32>
    %6 = tpu.matmul %4, %5, %cst {dimension_numbers = #tpu.dot_dimension_numbers<[1], [0], [0], [1], [0, 0, 1, 1], [], []>} : vector<256x147xbf16>, vector<147x64xbf16>, vector<256x64xf32> -> vector<256x64xf32>
    %7 = arith.addf %3, %6 : vector<256x64xf32>
    %c0_6 = arith.constant 0 : index
    %c0_7 = arith.constant 0 : index
    %8 = vector.load %arg6[%c0_6, %c0_7] : memref<256x64xf32, #tpu.memory_space<vmem>>, vector<256x64xf32>
    tpu.vector_store %arg6[%c0_6, %c0_7], %7 {strides = array<i32>} : memref<256x64xf32, #tpu.memory_space<vmem>>, vector<256x64xf32>,
    %c0_i32_8 = arith.constant 0 : i32
    %9 = arith.cmpi eq, %arg2, %c0_i32_8 : i32
    %10 = arith.extui %9 : i1 to i32
    %c0_i32_9 = arith.constant 0 : i32
    %11 = arith.cmpi ne, %10, %c0_i32_9 : i32
    scf.if %11 {
      %c0_10 = arith.constant 0 : index
      %c0_11 = arith.constant 0 : index
      %12 = vector.load %arg6[%c0_10, %c0_11] : memref<256x64xf32, #tpu.memory_space<vmem>>, vector<256x64xf32>
      %c0_12 = arith.constant 0 : index
      %c0_13 = arith.constant 0 : index
      %13 = vector.load %arg5[%c0_12, %c0_13] : memref<256x64xf32, #tpu.memory_space<vmem>>, vector<256x64xf32>
      tpu.vector_store %arg5[%c0_12, %c0_13], %12 {strides = array<i32>} : memref<256x64xf32, #tpu.memory_space<vmem>>, vector<256x64xf32>,
    } else {
    }
    return
  }
  func.func @transform_0(%arg0: i32, %arg1: i32, %arg2: i32) -> (i32, i32) {
    %c0_i32 = arith.constant 0 : i32
    return %arg0, %arg2 : i32, i32
  }
  func.func @transform_1(%arg0: i32, %arg1: i32, %arg2: i32) -> (i32, i32) {
    %c0_i32 = arith.constant 0 : i32
    return %arg2, %arg1 : i32, i32
  }
  func.func @transform_2(%arg0: i32, %arg1: i32, %arg2: i32) -> (i32, i32) {
    %c0_i32 = arith.constant 0 : i32
    return %arg0, %arg1 : i32, i32
  }
}

</mosaic_0001>

<bundles_post_ra>
// kernel: tpu_custom_call.1
= control target key start
LH: loop header
LB: loop body
LE: loop exit
PB: predicated region body
PF: predicated region fallthrough
CT: control target
= control target key end

     0   :  { %s1218_s9 = smov 0   ;;  %s1220_s10 = smov 0   ;;  %s1488_s0 = inlined_call_operand.vmem [shape: bf16[512,147], index: 0, kind: input, shape index: {}]   ;;  %s1489_s1 = inlined_call_operand.vmem [shape: bf16[147,64], index: 1, kind: input, shape index: {}]   ;;  %s1490_s2 = inlined_call_operand.vmem [shape: f32[512,64], index: 2, kind: output, shape index: {}]  }
   0x1   :  { %s1222_s11 = smov 0  }
   0x2 LB: > { %s31_s12 = sadd.s32 1, %s1194_s10  ;;  %p1004_p0 = scmp.ge.s32.totalorder %s1198_s11, 1  ;;  %s1198_s11 = sphi %s1222_s11, %s12_s11   ;;  %s1194_s10 = sphi %s1220_s10, %s1492_s10   ;;  %s1190_s9 = sphi %s1218_s9, %s1491_s9  }
   0x3   : > { %p33_p1 = scmp.ge.s32.totalorder %s31_s12, 2  ;;  %p158_p2 = scmp.lt.s32.totalorder %s1198_s11, 3 }
   0x5   : > { %s1494_s12 = smov (%p33_p1, %s31_s12), 0  ;;  %p159_p3 = pnand %p1004_p0, %p158_p2 }
   0x6   : > { %v1118_v0 = vld [vmem:[%s1489_s1] sm:$0xff] (!%p159_p3)   ;;  %v1200_v1 = vmov (!%p159_p3), 0   ;;  %v1119_v2 = vld [vmem:[%s1489_s1 + $0x8] sm:$0xff] (!%p159_p3)   ;;  %v1120_v3 = vld [vmem:[%s1489_s1 + $0x10] sm:$0xff] (!%p159_p3)   ;;  %s1005_s19 = sshll.u32 (!%p159_p3), %s1190_s9, 5  ;;  %vm231_vm0 = vcmask (!%p159_p3), 523264  }
   0x7   : > { %162 = sbr.rel (%p159_p3) target bundleno = 329 (0x149), region = 28  ;;  %604 = vmatprep.subr.bf16.mxu0 (!%p159_p3), %v1200_v1  ;;  %1071 = vmatprep.subr.bf16.mxu1 (!%p159_p3), %v1200_v1  ;;  %p198_p4 = scmp.lt.s32.totalorder (!%p159_p3), %s1005_s19, 63  ;;  %v1121_v4 = vld [vmem:[%s1489_s1 + $0x18] sm:$0xff] (!%p159_p3)   ;;  %v1201_v5 = vmov (!%p159_p3), 0.0   ;;  %v1122_v6 = vld [vmem:[%s1489_s1 + $0x20] sm:$0xff] (!%p159_p3)   ;;  %vm548_vm1 = vcmask (!%p159_p3), 154624  }
   0x8   : > { %605 = vmatpush1.bf16.msra.mxu0 (!%p159_p3), %v1118_v0  ;;  %1081 = vmatpush1.bf16.msra.mxu1 (!%p159_p3), %v1118_v0  ;;  %232 = vst.msk [vmem:[#allocation2] sm:$0xff] (!%p159_p3), %vm231_vm0, %v1201_v5  ;;  %233 = vst.msk [vmem:[#allocation2 + $0x8] sm:$0xff] (!%p159_p3), %vm231_vm0, %v1201_v5  ;;  %v1123_v9 = vld [vmem:[%s1489_s1 + $0x28] sm:$0xff] (!%p159_p3)   ;;  %v1124_v10 = vld [vmem:[%s1489_s1 + $0x30] sm:$0xff] (!%p159_p3)   ;;  %vm597_vm2 = vcmask (!%p159_p3), 1040384   ;;  %vm598_vm3 = vcmask (!%p159_p3), 1041408  }
   0x9   : > { %606 = vmatprep.subr.bf16.mxu0 (!%p159_p3), %v1200_v1  ;;  %1072 = vmatprep.subr.bf16.mxu1 (!%p159_p3), %v1200_v1  ;;  %234 = vst.msk [vmem:[#allocation2 + $0x10] sm:$0xff] (!%p159_p3), %vm231_vm0, %v1201_v5  ;;  %235 = vst.msk [vmem:[#allocation2 + $0x18] sm:$0xff] (!%p159_p3), %vm231_vm0, %v1201_v5  ;;  %v1125_v11 = vld [vmem:[%s1489_s1 + $0x38] sm:$0xff] (!%p159_p3)   ;;  %v1202_v12 = vmov (!%p159_p3), 65535   ;;  %v1126_v14 = vld [vmem:[%s1489_s1 + $0x40] sm:$0xff] (!%p159_p3)  }
   0xa   : > { %236 = vst.msk [vmem:[#allocation2 + $0x20] sm:$0xff] (!%p159_p3), %vm231_vm0, %v1201_v5  ;;  %237 = vst.msk [vmem:[#allocation2 + $0x28] sm:$0xff] (!%p159_p3), %vm231_vm0, %v1201_v5  ;;  %v599_v13 = vsel (!%p159_p3), %vm597_vm2, 4294967295, %v1202_v12  ;;  %v1127_v15 = vld [vmem:[%s1489_s1 + $0x48] ss:$0 sps:$4 sm:$0x33] (!%p159_p3)  }
   0xb   : > { %238 = vst.msk [vmem:[#allocation2 + $0x30] sm:$0xff] (!%p159_p3), %vm231_vm0, %v1201_v5  ;;  %239 = vst.msk [vmem:[#allocation2 + $0x38] sm:$0xff] (!%p159_p3), %vm231_vm0, %v1201_v5  ;;  %v600_v16 = vsel (!%p159_p3), %vm598_vm3, %v599_v13, 0 }
   0xc   : > { %607 = vmatpush1.bf16.msra.mxu0 (!%p159_p3), %v1119_v2  ;;  %1082 = vmatpush1.bf16.msra.mxu1 (!%p159_p3), %v1119_v2  ;;  %240 = vst.msk [vmem:[#allocation2 + $0x40] sm:$0xff] (!%p159_p3), %vm231_vm0, %v1201_v5  ;;  %241 = vst.msk [vmem:[#allocation2 + $0x48] sm:$0xff] (!%p159_p3), %vm231_vm0, %v1201_v5  ;;  %v602_v17 = vand.u32 (!%p159_p3), %v1127_v15, %v600_v16 }
   0xd   : > { %608 = vmatprep.subr.bf16.mxu0 (!%p159_p3), %v1200_v1  ;;  %1073 = vmatprep.subr.bf16.mxu1 (!%p159_p3), %v1200_v1  ;;  %242 = vst.msk [vmem:[#allocation2 + $0x50] sm:$0xff] (!%p159_p3), %vm231_vm0, %v1201_v5  ;;  %243 = vst.msk [vmem:[#allocation2 + $0x58] sm:$0xff] (!%p159_p3), %vm231_vm0, %v1201_v5 }
   0xe   : > { %s1496_s19 = smov (!%p198_p4, %s1005_s19), 63  ;;  %244 = vst.msk [vmem:[#allocation2 + $0x60] sm:$0xff] %vm231_vm0, %v1201_v5  ;;  %245 = vst.msk [vmem:[#allocation2 + $0x68] sm:$0xff] %vm231_vm0, %v1201_v5 }
   0xf   : > { %s1070_s22 = sshll.u32 %s1496_s19, 3  ;;  %246 = vst.msk [vmem:[#allocation2 + $0x70] sm:$0xff] %vm231_vm0, %v1201_v5  ;;  %247 = vst.msk [vmem:[#allocation2 + $0x78] sm:$0xff] %vm231_vm0, %v1201_v5  ;;  %v264_v48 = vld [vmem:[#allocation2] sm:$0xff]  ;;  %v265_v52 = vld [vmem:[#allocation2 + $0x8] sm:$0xff] }
  0x10   : > { %609 = vmatpush1.bf16.msra.mxu0 %v1120_v3  ;;  %1083 = vmatpush1.bf16.msra.mxu1 %v1120_v3  ;;  %248 = vst.msk [vmem:[#allocation2 + $0x80] sm:$0xff] %vm231_vm0, %v1201_v5  ;;  %249 = vst.msk [vmem:[#allocation2 + $0x88] sm:$0xff] %vm231_vm0, %v1201_v5  ;;  %s1296_s25 = scalar_lea.vmem %s1488_s0, %s1070_s22  ;;  %v266_v0 = vld [vmem:[#allocation2 + $0x10] sm:$0xff]  ;;  %s1385_s15 = scalar_lea.vmem %s1490_s2, %s1070_s22 }
  0x11   : > { %610 = vmatprep.subr.bf16.mxu0 %v1200_v1  ;;  %1074 = vmatprep.subr.bf16.mxu1 %v1200_v1  ;;  %250 = vst.msk [vmem:[#allocation2 + $0x90] sm:$0xff] %vm231_vm0, %v1201_v5  ;;  %251 = vst.msk [vmem:[#allocation2 + $0x98] sm:$0xff] %vm231_vm0, %v1201_v5  ;;  %v1130_v7 = vld [vmem:[%s1296_s25 + $0x4] ss:$8 sps:$4 sm:$0xff]   ;;  %v1128_v18 = vld [vmem:[%s1296_s25] ss:$8 sps:$4 sm:$0xff]  }
  0x12   : > { %252 = vst.msk [vmem:[#allocation2 + $0xa0] sm:$0xff] %vm231_vm0, %v1201_v5  ;;  %253 = vst.msk [vmem:[#allocation2 + $0xa8] sm:$0xff] %vm231_vm0, %v1201_v5  ;;  %v1133_v8 = vld [vmem:[%s1296_s25 + $0x84] ss:$8 sps:$4 sm:$0xff]   ;;  %1052 = vmatprep.mubr.msk.bf16.mxu0 %vm548_vm1, %v1130_v7  ;;  %v1131_v19 = vld [vmem:[%s1296_s25 + $0x80] ss:$8 sps:$4 sm:$0xff]  }
  0x13   : > { %254 = vst.msk [vmem:[#allocation2 + $0xb0] sm:$0xff] %vm231_vm0, %v1201_v5  ;;  %255 = vst.msk [vmem:[#allocation2 + $0xb8] sm:$0xff] %vm231_vm0, %v1201_v5  ;;  %1060 = vmatprep.mubr.msk.bf16.mxu1 %vm548_vm1, %v1133_v8  ;;  %v1134_v20 = vld [vmem:[%s1296_s25 + $0x14] ss:$8 sps:$4 sm:$0xff]   ;;  %v1138_v22 = vld [vmem:[%s1296_s25 + $0x10] ss:$8 sps:$4 sm:$0xff]  }
  0x14   : > { %256 = vst.msk [vmem:[#allocation2 + $0xc0] sm:$0xff] %vm231_vm0, %v1201_v5  ;;  %257 = vst.msk [vmem:[#allocation2 + $0xc8] sm:$0xff] %vm231_vm0, %v1201_v5  ;;  %611 = vmatpush1.bf16.msra.mxu0 %v1121_v4  ;;  %1084 = vmatpush1.bf16.msra.mxu1 %v1121_v4  ;;  %v1136_v21 = vld [vmem:[%s1296_s25 + $0x94] ss:$8 sps:$4 sm:$0xff]   ;;  %v1139_v23 = vld [vmem:[%s1296_s25 + $0x90] ss:$8 sps:$4 sm:$0xff]  }
  0x15   : > { %258 = vst.msk [vmem:[#allocation2 + $0xd0] sm:$0xff] %vm231_vm0, %v1201_v5  ;;  %259 = vst.msk [vmem:[#allocation2 + $0xd8] sm:$0xff] %vm231_vm0, %v1201_v5  ;;  %612 = vmatprep.subr.bf16.mxu0 %v1200_v1  ;;  %1075 = vmatprep.subr.bf16.mxu1 %v1200_v1  ;;  %v1140_v24 = vld [vmem:[%s1296_s25 + $0x24] ss:$8 sps:$4 sm:$0xff]   ;;  %v1144_v26 = vld [vmem:[%s1296_s25 + $0x20] ss:$8 sps:$4 sm:$0xff]  }
  0x16   : > { %260 = vst.msk [vmem:[#allocation2 + $0xe0] sm:$0xff] %vm231_vm0, %v1201_v5  ;;  %261 = vst.msk [vmem:[#allocation2 + $0xe8] sm:$0xff] %vm231_vm0, %v1201_v5  ;;  %v1142_v25 = vld [vmem:[%s1296_s25 + $0xa4] ss:$8 sps:$4 sm:$0xff]   ;;  %v1145_v27 = vld [vmem:[%s1296_s25 + $0xa0] ss:$8 sps:$4 sm:$0xff]  }
  0x17   : > { %262 = vst.msk [vmem:[#allocation2 + $0xf0] sm:$0xff] %vm231_vm0, %v1201_v5  ;;  %263 = vst.msk [vmem:[#allocation2 + $0xf8] sm:$0xff] %vm231_vm0, %v1201_v5  ;;  %v1146_v28 = vld [vmem:[%s1296_s25 + $0x34] ss:$8 sps:$4 sm:$0xff]   ;;  %v1150_v30 = vld [vmem:[%s1296_s25 + $0x30] ss:$8 sps:$4 sm:$0xff]  }
  0x18   : > { %613 = vmatpush1.bf16.msra.mxu0 %v1122_v6  ;;  %1085 = vmatpush1.bf16.msra.mxu1 %v1122_v6  ;;  %v1148_v29 = vld [vmem:[%s1296_s25 + $0xb4] ss:$8 sps:$4 sm:$0xff]   ;;  %v1151_v31 = vld [vmem:[%s1296_s25 + $0xb0] ss:$8 sps:$4 sm:$0xff]   ;;  %v1152_v32 = vld [vmem:[%s1296_s25 + $0x44] ss:$8 sps:$4 sm:$0xff]  }
  0x19   : > { %614 = vmatprep.subr.bf16.mxu0 %v1200_v1  ;;  %1076 = vmatprep.subr.bf16.mxu1 %v1200_v1  ;;  %v1154_v33 = vld [vmem:[%s1296_s25 + $0xc4] ss:$8 sps:$4 sm:$0xff]   ;;  %v1156_v34 = vld [vmem:[%s1296_s25 + $0x40] ss:$8 sps:$4 sm:$0xff]   ;;  %v1158_v36 = vld [vmem:[%s1296_s25 + $0x54] ss:$8 sps:$4 sm:$0xff]  }
  0x1a   : > { %v1157_v35 = vld [vmem:[%s1296_s25 + $0xc0] ss:$8 sps:$4 sm:$0xff]   ;;  %v1160_v37 = vld [vmem:[%s1296_s25 + $0xd4] ss:$8 sps:$4 sm:$0xff]   ;;  %v1162_v38 = vld [vmem:[%s1296_s25 + $0x50] ss:$8 sps:$4 sm:$0xff]  }
  0x1b   : > { %v1163_v39 = vld [vmem:[%s1296_s25 + $0xd0] ss:$8 sps:$4 sm:$0xff]   ;;  %v1164_v40 = vld [vmem:[%s1296_s25 + $0x64] ss:$8 sps:$4 sm:$0xff]   ;;  %v1168_v42 = vld [vmem:[%s1296_s25 + $0x60] ss:$8 sps:$4 sm:$0xff]  }
  0x1c   : > { %615 = vmatpush1.bf16.msra.mxu0 %v1123_v9  ;;  %1086 = vmatpush1.bf16.msra.mxu1 %v1123_v9  ;;  %v1166_v41 = vld [vmem:[%s1296_s25 + $0xe4] ss:$8 sps:$4 sm:$0xff]   ;;  %v1169_v43 = vld [vmem:[%s1296_s25 + $0xe0] ss:$8 sps:$4 sm:$0xff]   ;;  %v1170_v44 = vld [vmem:[%s1296_s25 + $0x74] ss:$8 sps:$4 sm:$0xff]  }
  0x1d   : > { %616 = vmatprep.subr.bf16.mxu0 %v1200_v1  ;;  %1077 = vmatprep.subr.bf16.mxu1 %v1200_v1  ;;  %v1172_v45 = vld [vmem:[%s1296_s25 + $0xf4] ss:$8 sps:$4 sm:$0xff]   ;;  %v1174_v46 = vld [vmem:[%s1296_s25 + $0x70] ss:$8 sps:$4 sm:$0xff]   ;;  %v280_v49 = vld [vmem:[#allocation2 + $0x80] sm:$0xff] }
  0x1e   : > { %v1175_v47 = vld [vmem:[%s1296_s25 + $0xf0] ss:$8 sps:$4 sm:$0xff]   ;;  %v281_v53 = vld [vmem:[#allocation2 + $0x88] sm:$0xff] }
  0x1f   : > { %v267_v4 = vld [vmem:[#allocation2 + $0x18] sm:$0xff] }
  0x20   : > { %617 = vmatpush1.bf16.msra.mxu0 %v1124_v10  ;;  %1087 = vmatpush1.bf16.msra.mxu1 %v1124_v10  ;;  %v283_v5 = vld [vmem:[#allocation2 + $0x98] sm:$0xff] }
  0x21   : > { %618 = vmatprep.subr.bf16.mxu0 %v1200_v1  ;;  %1078 = vmatprep.subr.bf16.mxu1 %v1200_v1 }
  0x24   : > { %619 = vmatpush1.bf16.msra.mxu0 %v1125_v11  ;;  %1088 = vmatpush1.bf16.msra.mxu1 %v1125_v11 }
  0x25   : > { %620 = vmatprep.subr.bf16.mxu0 %v1200_v1  ;;  %1079 = vmatprep.subr.bf16.mxu1 %v1200_v1 }
  0x28   : > { %621 = vmatpush1.bf16.msra.mxu0 %v1126_v14  ;;  %1089 = vmatpush1.bf16.msra.mxu1 %v1126_v14 }
  0x29   : > { %622 = vmatprep.subr.bf16.mxu0 %v1200_v1  ;;  %1080 = vmatprep.subr.bf16.mxu1 %v1200_v1  ;;  %v282_v1 = vld [vmem:[#allocation2 + $0x90] sm:$0xff] }
  0x2c   : > { %623 = vmatpush1.bf16.msra.mxu0 %v602_v17  ;;  %1090 = vmatpush1.bf16.msra.mxu1 %v602_v17 }
  0x2f   : > { %637 = vmatmul.mubr.bf16.vlgmr.msra.gmra.mrb[0].mxu0 %v1128_v18  ;;  %701 = vmatmul.mubr.bf16.vlgmr.msra.gmra.mrb[0].mxu1 %v1131_v19 }
  0x30   : > { %1053 = vmatprep.mubr.msk.bf16.mxu0 %vm548_vm1, %v1134_v20  ;;  %1061 = vmatprep.mubr.msk.bf16.mxu1 %vm548_vm1, %v1136_v21  ;;  %v268_v20 = vld [vmem:[#allocation2 + $0x20] sm:$0xff] }
  0x31   : > { %v284_v21 = vld [vmem:[#allocation2 + $0xa0] sm:$0xff] }
  0x37   : > { %645 = vmatmul.mubr.bf16.gmra.mrb[4].mxu0 %v1138_v22  ;;  %709 = vmatmul.mubr.bf16.gmra.mrb[4].mxu1 %v1139_v23 }
  0x38   : > { %1054 = vmatprep.mubr.msk.bf16.mxu0 %vm548_vm1, %v1140_v24  ;;  %1062 = vmatprep.mubr.msk.bf16.mxu1 %vm548_vm1, %v1142_v25  ;;  %v269_v24 = vld [vmem:[#allocation2 + $0x28] sm:$0xff] }
  0x39   : > { %v285_v25 = vld [vmem:[#allocation2 + $0xa8] sm:$0xff] }
  0x3f   : > { %653 = vmatmul.mubr.bf16.gmra.mrb[8].mxu0 %v1144_v26  ;;  %717 = vmatmul.mubr.bf16.gmra.mrb[8].mxu1 %v1145_v27 }
  0x40   : > { %1055 = vmatprep.mubr.msk.bf16.mxu0 %vm548_vm1, %v1146_v28  ;;  %1063 = vmatprep.mubr.msk.bf16.mxu1 %vm548_vm1, %v1148_v29 }
  0x47   : > { %661 = vmatmul.mubr.bf16.gmra.mrb[12].mxu0 %v1150_v30  ;;  %725 = vmatmul.mubr.bf16.gmra.mrb[12].mxu1 %v1151_v31 }
  0x48   : > { %1056 = vmatprep.mubr.msk.bf16.mxu0 %vm548_vm1, %v1152_v32  ;;  %1064 = vmatprep.mubr.msk.bf16.mxu1 %vm548_vm1, %v1154_v33 }
  0x4f   : > { %669 = vmatmul.mubr.bf16.gmra.mrb[16].mxu0 %v1156_v34  ;;  %733 = vmatmul.mubr.bf16.gmra.mrb[16].mxu1 %v1157_v35 }
  0x50   : > { %1057 = vmatprep.mubr.msk.bf16.mxu0 %vm548_vm1, %v1158_v36  ;;  %1065 = vmatprep.mubr.msk.bf16.mxu1 %vm548_vm1, %v1160_v37 }
  0x57   : > { %677 = vmatmul.mubr.bf16.gmra.mrb[20].mxu0 %v1162_v38  ;;  %741 = vmatmul.mubr.bf16.gmra.mrb[20].mxu1 %v1163_v39 }
  0x58   : > { %1058 = vmatprep.mubr.msk.bf16.mxu0 %vm548_vm1, %v1164_v40  ;;  %1066 = vmatprep.mubr.msk.bf16.mxu1 %vm548_vm1, %v1166_v41  ;;  %v270_v40 = vld [vmem:[#allocation2 + $0x30] sm:$0xff] }
  0x59   : > { %v286_v41 = vld [vmem:[#allocation2 + $0xb0] sm:$0xff] }
  0x5f   : > { %685 = vmatmul.mubr.bf16.gmra.mrb[24].mxu0 %v1168_v42  ;;  %749 = vmatmul.mubr.bf16.gmra.mrb[24].mxu1 %v1169_v43 }
  0x60   : > { %1059 = vmatprep.mubr.msk.bf16.mxu0 %vm548_vm1, %v1170_v44  ;;  %1067 = vmatprep.mubr.msk.bf16.mxu1 %vm548_vm1, %v1172_v45  ;;  %v271_v44 = vld [vmem:[#allocation2 + $0x38] sm:$0xff] }
  0x61   : > { %v287_v45 = vld [vmem:[#allocation2 + $0xb8] sm:$0xff] }
  0x67   : > { %693 = vmatmul.mubr.bf16.gmra.mrb[28].mxu0 %v1174_v46  ;;  %757 = vmatmul.mubr.bf16.gmra.mrb[28].mxu1 %v1175_v47 }
 0x102   : > { %v638_v50 = vpop.f32.mrb[0].mxu0  ;;  %v702_v51 = vpop.f32.mrb[0].mxu1 }
 0x103   : > { %v765_v54 = vadd.f32 %v638_v50, %v264_v48  ;;  %v781_v55 = vadd.f32 %v702_v51, %v280_v49  ;;  %v640_v56 = vpop.f32.mrb[1].mxu0  ;;  %v704_v57 = vpop.f32.mrb[1].mxu1 }
 0x104   : > { %v641_v58 = vpop.f32.mrb[2].mxu0  ;;  %v705_v59 = vpop.f32.mrb[2].mxu1 }
 0x105   : > { %798 = vst.msk [vmem:[#allocation2] sm:$0xff] %vm231_vm0, %v765_v54  ;;  %814 = vst.msk [vmem:[#allocation2 + $0x80] sm:$0xff] %vm231_vm0, %v781_v55  ;;  %v766_v60 = vadd.f32 %v641_v58, %v265_v52  ;;  %v782_v61 = vadd.f32 %v705_v59, %v281_v53  ;;  %v643_v62 = vpop.f32.mrb[3].mxu0  ;;  %v707_v63 = vpop.f32.mrb[3].mxu1 }
 0x107   : > { %799 = vst.msk [vmem:[#allocation2 + $0x8] sm:$0xff] %vm231_vm0, %v766_v60  ;;  %815 = vst.msk [vmem:[#allocation2 + $0x88] sm:$0xff] %vm231_vm0, %v782_v61  ;;  %v272_v60 = vld [vmem:[#allocation2 + $0x40] sm:$0xff] }
 0x108   : > { %v288_v61 = vld [vmem:[#allocation2 + $0xc0] sm:$0xff] }
 0x10a   : > { %v646_v2 = vpop.f32.mrb[4].mxu0  ;;  %v710_v3 = vpop.f32.mrb[4].mxu1 }
 0x10b   : > { %v767_v6 = vadd.f32 %v646_v2, %v266_v0  ;;  %v783_v7 = vadd.f32 %v710_v3, %v282_v1  ;;  %v648_v8 = vpop.f32.mrb[5].mxu0  ;;  %v712_v9 = vpop.f32.mrb[5].mxu1  ;;  %v273_v0 = vld [vmem:[#allocation2 + $0x48] sm:$0xff] }
 0x10c   : > { %v833_v10 = vld [vmem:[#allocation2] sm:$0xff]  ;;  %v649_v12 = vpop.f32.mrb[6].mxu0  ;;  %v713_v13 = vpop.f32.mrb[6].mxu1  ;;  %v289_v1 = vld [vmem:[#allocation2 + $0xc8] sm:$0xff] }
 0x10d   : > { %v849_v11 = vld [vmem:[#allocation2 + $0x80] sm:$0xff]  ;;  %865 = vst.msk [vmem:[%s1385_s15] sm:$0xff] %vm231_vm0, %v833_v10  ;;  %800 = vst.msk [vmem:[#allocation2 + $0x10] sm:$0xff] %vm231_vm0, %v767_v6  ;;  %v768_v14 = vadd.f32 %v649_v12, %v267_v4  ;;  %v784_v15 = vadd.f32 %v713_v13, %v283_v5  ;;  %v651_v16 = vpop.f32.mrb[7].mxu0  ;;  %v715_v17 = vpop.f32.mrb[7].mxu1 }
 0x10e   : > { %881 = vst.msk [vmem:[%s1385_s15 + $0x80] sm:$0xff] %vm231_vm0, %v849_v11  ;;  %816 = vst.msk [vmem:[#allocation2 + $0x90] sm:$0xff] %vm231_vm0, %v783_v7  ;;  %v834_v18 = vld [vmem:[#allocation2 + $0x8] sm:$0xff]  ;;  %v274_v16 = vld [vmem:[#allocation2 + $0x50] sm:$0xff] }
 0x10f   : > { %v850_v19 = vld [vmem:[#allocation2 + $0x88] sm:$0xff]  ;;  %866 = vst.msk [vmem:[%s1385_s15 + $0x8] sm:$0xff] %vm231_vm0, %v834_v18  ;;  %801 = vst.msk [vmem:[#allocation2 + $0x18] sm:$0xff] %vm231_vm0, %v768_v14  ;;  %v290_v17 = vld [vmem:[#allocation2 + $0xd0] sm:$0xff] }
 0x110   : > { %882 = vst.msk [vmem:[%s1385_s15 + $0x88] sm:$0xff] %vm231_vm0, %v850_v19  ;;  %817 = vst.msk [vmem:[#allocation2 + $0x98] sm:$0xff] %vm231_vm0, %v784_v15 }
 0x112   : > { %v654_v22 = vpop.f32.mrb[8].mxu0  ;;  %v718_v23 = vpop.f32.mrb[8].mxu1 }
 0x113   : > { %v769_v26 = vadd.f32 %v654_v22, %v268_v20  ;;  %v785_v27 = vadd.f32 %v718_v23, %v284_v21  ;;  %v656_v28 = vpop.f32.mrb[9].mxu0  ;;  %v720_v29 = vpop.f32.mrb[9].mxu1  ;;  %v275_v20 = vld [vmem:[#allocation2 + $0x58] sm:$0xff] }
 0x114   : > { %v835_v30 = vld [vmem:[#allocation2 + $0x10] sm:$0xff]  ;;  %v657_v32 = vpop.f32.mrb[10].mxu0  ;;  %v721_v33 = vpop.f32.mrb[10].mxu1  ;;  %v291_v21 = vld [vmem:[#allocation2 + $0xd8] sm:$0xff] }
 0x115   : > { %v851_v31 = vld [vmem:[#allocation2 + $0x90] sm:$0xff]  ;;  %867 = vst.msk [vmem:[%s1385_s15 + $0x10] sm:$0xff] %vm231_vm0, %v835_v30  ;;  %802 = vst.msk [vmem:[#allocation2 + $0x20] sm:$0xff] %vm231_vm0, %v769_v26  ;;  %v770_v34 = vadd.f32 %v657_v32, %v269_v24  ;;  %v786_v35 = vadd.f32 %v721_v33, %v285_v25  ;;  %v659_v36 = vpop.f32.mrb[11].mxu0  ;;  %v723_v37 = vpop.f32.mrb[11].mxu1 }
 0x116   : > { %883 = vst.msk [vmem:[%s1385_s15 + $0x90] sm:$0xff] %vm231_vm0, %v851_v31  ;;  %818 = vst.msk [vmem:[#allocation2 + $0xa0] sm:$0xff] %vm231_vm0, %v785_v27  ;;  %v836_v38 = vld [vmem:[#allocation2 + $0x18] sm:$0xff]  ;;  %v276_v36 = vld [vmem:[#allocation2 + $0x60] sm:$0xff] }
 0x117   : > { %v852_v39 = vld [vmem:[#allocation2 + $0x98] sm:$0xff]  ;;  %868 = vst.msk [vmem:[%s1385_s15 + $0x18] sm:$0xff] %vm231_vm0, %v836_v38  ;;  %803 = vst.msk [vmem:[#allocation2 + $0x28] sm:$0xff] %vm231_vm0, %v770_v34  ;;  %v292_v37 = vld [vmem:[#allocation2 + $0xe0] sm:$0xff] }
 0x118   : > { %884 = vst.msk [vmem:[%s1385_s15 + $0x98] sm:$0xff] %vm231_vm0, %v852_v39  ;;  %819 = vst.msk [vmem:[#allocation2 + $0xa8] sm:$0xff] %vm231_vm0, %v786_v35 }
 0x11a   : > { %v662_v42 = vpop.f32.mrb[12].mxu0  ;;  %v726_v43 = vpop.f32.mrb[12].mxu1 }
 0x11b   : > { %v771_v46 = vadd.f32 %v662_v42, %v270_v40  ;;  %v787_v47 = vadd.f32 %v726_v43, %v286_v41  ;;  %v664_v48 = vpop.f32.mrb[13].mxu0  ;;  %v728_v49 = vpop.f32.mrb[13].mxu1  ;;  %v277_v40 = vld [vmem:[#allocation2 + $0x68] sm:$0xff] }
 0x11c   : > { %v837_v50 = vld [vmem:[#allocation2 + $0x20] sm:$0xff]  ;;  %v665_v52 = vpop.f32.mrb[14].mxu0  ;;  %v729_v53 = vpop.f32.mrb[14].mxu1  ;;  %v293_v41 = vld [vmem:[#allocation2 + $0xe8] sm:$0xff] }
 0x11d   : > { %v853_v51 = vld [vmem:[#allocation2 + $0xa0] sm:$0xff]  ;;  %869 = vst.msk [vmem:[%s1385_s15 + $0x20] sm:$0xff] %vm231_vm0, %v837_v50  ;;  %804 = vst.msk [vmem:[#allocation2 + $0x30] sm:$0xff] %vm231_vm0, %v771_v46  ;;  %v772_v54 = vadd.f32 %v665_v52, %v271_v44  ;;  %v788_v55 = vadd.f32 %v729_v53, %v287_v45  ;;  %v667_v56 = vpop.f32.mrb[15].mxu0  ;;  %v731_v57 = vpop.f32.mrb[15].mxu1 }
 0x11e   : > { %885 = vst.msk [vmem:[%s1385_s15 + $0xa0] sm:$0xff] %vm231_vm0, %v853_v51  ;;  %820 = vst.msk [vmem:[#allocation2 + $0xb0] sm:$0xff] %vm231_vm0, %v787_v47  ;;  %v838_v58 = vld [vmem:[#allocation2 + $0x28] sm:$0xff]  ;;  %v278_v56 = vld [vmem:[#allocation2 + $0x70] sm:$0xff] }
 0x11f   : > { %v854_v59 = vld [vmem:[#allocation2 + $0xa8] sm:$0xff]  ;;  %870 = vst.msk [vmem:[%s1385_s15 + $0x28] sm:$0xff] %vm231_vm0, %v838_v58  ;;  %805 = vst.msk [vmem:[#allocation2 + $0x38] sm:$0xff] %vm231_vm0, %v772_v54  ;;  %v294_v57 = vld [vmem:[#allocation2 + $0xf0] sm:$0xff] }
 0x120   : > { %886 = vst.msk [vmem:[%s1385_s15 + $0xa8] sm:$0xff] %vm231_vm0, %v854_v59  ;;  %821 = vst.msk [vmem:[#allocation2 + $0xb8] sm:$0xff] %vm231_vm0, %v788_v55 }
 0x122   : > { %v670_v62 = vpop.f32.mrb[16].mxu0  ;;  %v734_v63 = vpop.f32.mrb[16].mxu1 }
 0x123   : > { %v773_v2 = vadd.f32 %v670_v62, %v272_v60  ;;  %v789_v3 = vadd.f32 %v734_v63, %v288_v61  ;;  %v672_v4 = vpop.f32.mrb[17].mxu0  ;;  %v736_v5 = vpop.f32.mrb[17].mxu1  ;;  %v279_v60 = vld [vmem:[#allocation2 + $0x78] sm:$0xff] }
 0x124   : > { %v839_v6 = vld [vmem:[#allocation2 + $0x30] sm:$0xff]  ;;  %v673_v8 = vpop.f32.mrb[18].mxu0  ;;  %v737_v9 = vpop.f32.mrb[18].mxu1  ;;  %v295_v61 = vld [vmem:[#allocation2 + $0xf8] sm:$0xff] }
 0x125   : > { %v855_v7 = vld [vmem:[#allocation2 + $0xb0] sm:$0xff]  ;;  %871 = vst.msk [vmem:[%s1385_s15 + $0x30] sm:$0xff] %vm231_vm0, %v839_v6  ;;  %806 = vst.msk [vmem:[#allocation2 + $0x40] sm:$0xff] %vm231_vm0, %v773_v2  ;;  %v774_v10 = vadd.f32 %v673_v8, %v273_v0  ;;  %v790_v11 = vadd.f32 %v737_v9, %v289_v1  ;;  %v675_v12 = vpop.f32.mrb[19].mxu0  ;;  %v739_v13 = vpop.f32.mrb[19].mxu1 }
 0x126   : > { %887 = vst.msk [vmem:[%s1385_s15 + $0xb0] sm:$0xff] %vm231_vm0, %v855_v7  ;;  %822 = vst.msk [vmem:[#allocation2 + $0xc0] sm:$0xff] %vm231_vm0, %v789_v3  ;;  %v840_v14 = vld [vmem:[#allocation2 + $0x38] sm:$0xff] }
 0x127   : > { %v856_v15 = vld [vmem:[#allocation2 + $0xb8] sm:$0xff]  ;;  %872 = vst.msk [vmem:[%s1385_s15 + $0x38] sm:$0xff] %vm231_vm0, %v840_v14  ;;  %807 = vst.msk [vmem:[#allocation2 + $0x48] sm:$0xff] %vm231_vm0, %v774_v10 }
 0x128   : > { %888 = vst.msk [vmem:[%s1385_s15 + $0xb8] sm:$0xff] %vm231_vm0, %v856_v15  ;;  %823 = vst.msk [vmem:[#allocation2 + $0xc8] sm:$0xff] %vm231_vm0, %v790_v11 }
 0x12a   : > { %v678_v18 = vpop.f32.mrb[20].mxu0  ;;  %v742_v19 = vpop.f32.mrb[20].mxu1 }
 0x12b   : > { %v775_v22 = vadd.f32 %v678_v18, %v274_v16  ;;  %v791_v23 = vadd.f32 %v742_v19, %v290_v17  ;;  %v680_v24 = vpop.f32.mrb[21].mxu0  ;;  %v744_v25 = vpop.f32.mrb[21].mxu1 }
 0x12c   : > { %v841_v26 = vld [vmem:[#allocation2 + $0x40] sm:$0xff]  ;;  %v681_v28 = vpop.f32.mrb[22].mxu0  ;;  %v745_v29 = vpop.f32.mrb[22].mxu1 }
 0x12d   : > { %v857_v27 = vld [vmem:[#allocation2 + $0xc0] sm:$0xff]  ;;  %873 = vst.msk [vmem:[%s1385_s15 + $0x40] sm:$0xff] %vm231_vm0, %v841_v26  ;;  %808 = vst.msk [vmem:[#allocation2 + $0x50] sm:$0xff] %vm231_vm0, %v775_v22  ;;  %v776_v30 = vadd.f32 %v681_v28, %v275_v20  ;;  %v792_v31 = vadd.f32 %v745_v29, %v291_v21  ;;  %v683_v32 = vpop.f32.mrb[23].mxu0  ;;  %v747_v33 = vpop.f32.mrb[23].mxu1 }
 0x12e   : > { %889 = vst.msk [vmem:[%s1385_s15 + $0xc0] sm:$0xff] %vm231_vm0, %v857_v27  ;;  %824 = vst.msk [vmem:[#allocation2 + $0xd0] sm:$0xff] %vm231_vm0, %v791_v23  ;;  %v842_v34 = vld [vmem:[#allocation2 + $0x48] sm:$0xff] }
 0x12f   : > { %v858_v35 = vld [vmem:[#allocation2 + $0xc8] sm:$0xff]  ;;  %874 = vst.msk [vmem:[%s1385_s15 + $0x48] sm:$0xff] %vm231_vm0, %v842_v34  ;;  %809 = vst.msk [vmem:[#allocation2 + $0x58] sm:$0xff] %vm231_vm0, %v776_v30 }
 0x130   : > { %890 = vst.msk [vmem:[%s1385_s15 + $0xc8] sm:$0xff] %vm231_vm0, %v858_v35  ;;  %825 = vst.msk [vmem:[#allocation2 + $0xd8] sm:$0xff] %vm231_vm0, %v792_v31 }
 0x132   : > { %v686_v38 = vpop.f32.mrb[24].mxu0  ;;  %v750_v39 = vpop.f32.mrb[24].mxu1 }
 0x133   : > { %v777_v42 = vadd.f32 %v686_v38, %v276_v36  ;;  %v793_v43 = vadd.f32 %v750_v39, %v292_v37  ;;  %v688_v44 = vpop.f32.mrb[25].mxu0  ;;  %v752_v45 = vpop.f32.mrb[25].mxu1 }
 0x134   : > { %v843_v46 = vld [vmem:[#allocation2 + $0x50] sm:$0xff]  ;;  %v689_v48 = vpop.f32.mrb[26].mxu0  ;;  %v753_v49 = vpop.f32.mrb[26].mxu1 }
 0x135   : > { %v859_v47 = vld [vmem:[#allocation2 + $0xd0] sm:$0xff]  ;;  %875 = vst.msk [vmem:[%s1385_s15 + $0x50] sm:$0xff] %vm231_vm0, %v843_v46  ;;  %810 = vst.msk [vmem:[#allocation2 + $0x60] sm:$0xff] %vm231_vm0, %v777_v42  ;;  %v778_v50 = vadd.f32 %v689_v48, %v277_v40  ;;  %v794_v51 = vadd.f32 %v753_v49, %v293_v41  ;;  %v691_v52 = vpop.f32.mrb[27].mxu0  ;;  %v755_v53 = vpop.f32.mrb[27].mxu1 }
 0x136   : > { %891 = vst.msk [vmem:[%s1385_s15 + $0xd0] sm:$0xff] %vm231_vm0, %v859_v47  ;;  %826 = vst.msk [vmem:[#allocation2 + $0xe0] sm:$0xff] %vm231_vm0, %v793_v43  ;;  %v844_v54 = vld [vmem:[#allocation2 + $0x58] sm:$0xff] }
 0x137   : > { %v860_v55 = vld [vmem:[#allocation2 + $0xd8] sm:$0xff]  ;;  %876 = vst.msk [vmem:[%s1385_s15 + $0x58] sm:$0xff] %vm231_vm0, %v844_v54  ;;  %811 = vst.msk [vmem:[#allocation2 + $0x68] sm:$0xff] %vm231_vm0, %v778_v50 }
 0x138   : > { %892 = vst.msk [vmem:[%s1385_s15 + $0xd8] sm:$0xff] %vm231_vm0, %v860_v55  ;;  %827 = vst.msk [vmem:[#allocation2 + $0xe8] sm:$0xff] %vm231_vm0, %v794_v51 }
 0x13a   : > { %v694_v58 = vpop.f32.mrb[28].mxu0  ;;  %v758_v59 = vpop.f32.mrb[28].mxu1 }
 0x13b   : > { %v779_v62 = vadd.f32 %v694_v58, %v278_v56  ;;  %v795_v63 = vadd.f32 %v758_v59, %v294_v57  ;;  %v696_v0 = vpop.f32.mrb[29].mxu0  ;;  %v760_v1 = vpop.f32.mrb[29].mxu1 }
 0x13c   : > { %v845_v2 = vld [vmem:[#allocation2 + $0x60] sm:$0xff]  ;;  %v697_v4 = vpop.f32.mrb[30].mxu0  ;;  %v761_v5 = vpop.f32.mrb[30].mxu1 }
 0x13d   : > { %v861_v3 = vld [vmem:[#allocation2 + $0xe0] sm:$0xff]  ;;  %877 = vst.msk [vmem:[%s1385_s15 + $0x60] sm:$0xff] %vm231_vm0, %v845_v2  ;;  %812 = vst.msk [vmem:[#allocation2 + $0x70] sm:$0xff] %vm231_vm0, %v779_v62  ;;  %v780_v6 = vadd.f32 %v697_v4, %v279_v60  ;;  %v796_v7 = vadd.f32 %v761_v5, %v295_v61  ;;  %v699_v8 = vpop.f32.mrb[31].mxu0  ;;  %v763_v9 = vpop.f32.mrb[31].mxu1 }
 0x13e   : > { %893 = vst.msk [vmem:[%s1385_s15 + $0xe0] sm:$0xff] %vm231_vm0, %v861_v3  ;;  %828 = vst.msk [vmem:[#allocation2 + $0xf0] sm:$0xff] %vm231_vm0, %v795_v63  ;;  %v846_v10 = vld [vmem:[#allocation2 + $0x68] sm:$0xff] }
 0x13f   : > { %v862_v11 = vld [vmem:[#allocation2 + $0xe8] sm:$0xff]  ;;  %878 = vst.msk [vmem:[%s1385_s15 + $0x68] sm:$0xff] %vm231_vm0, %v846_v10  ;;  %813 = vst.msk [vmem:[#allocation2 + $0x78] sm:$0xff] %vm231_vm0, %v780_v6 }
 0x140   : > { %894 = vst.msk [vmem:[%s1385_s15 + $0xe8] sm:$0xff] %vm231_vm0, %v862_v11  ;;  %829 = vst.msk [vmem:[#allocation2 + $0xf8] sm:$0xff] %vm231_vm0, %v796_v7 }
 0x144   : > { %v847_v12 = vld [vmem:[#allocation2 + $0x70] sm:$0xff] }
 0x145   : > { %v863_v13 = vld [vmem:[#allocation2 + $0xf0] sm:$0xff]  ;;  %879 = vst.msk [vmem:[%s1385_s15 + $0x70] sm:$0xff] %vm231_vm0, %v847_v12 }
 0x146   : > { %895 = vst.msk [vmem:[%s1385_s15 + $0xf0] sm:$0xff] %vm231_vm0, %v863_v13  ;;  %v848_v14 = vld [vmem:[#allocation2 + $0x78] sm:$0xff] }
 0x147   : > { %v864_v15 = vld [vmem:[#allocation2 + $0xf8] sm:$0xff]  ;;  %880 = vst.msk [vmem:[%s1385_s15 + $0x78] sm:$0xff] %vm231_vm0, %v848_v14 }
 0x148   : > { %896 = vst.msk [vmem:[%s1385_s15 + $0xf8] sm:$0xff] %vm231_vm0, %v864_v15 }
 0x149 PF: > { %s12_s11 = sadd.s32 1, %s1198_s11   ;;  %s1491_s9 = smov %s1194_s10 }
 0x14a   : > { %p9_p5 = scmp.ge.s32.totalorder %s12_s11, 4   ;;  %s1492_s10 = smov %s1494_s12 }
 0x14c   :  { %11 = sbr.rel (!%p9_p5) target bundleno = 2 (0x2), region = 69 }

</bundles_post_ra>
